<compile_context>
chip_gen: v7x
topology: tpu7x:2x2x1
jax: 0.10.0
libtpu: 0.0.40
codegen_flags: <defaults>
</compile_context>

<pallas_src>
import math

import jax
import jax.numpy as jnp
import numpy as np
from jax.experimental import pallas as pl
from jax.experimental.pallas import tpu as pltpu


def _round_up(x, m):
    return ((x + m - 1) // m) * m


def _largest_tile(dim, cap):
    """Largest multiple of 128 that divides `dim` and is <= cap (dim % 128 == 0)."""
    best = 128
    t = 128
    limit = min(dim, max(cap, 128))
    while t <= limit:
        if dim % t == 0:
            best = t
        t += 128
    return best


def _vmem_limit_bytes():
    """~3/4 of physical VMEM: 96 MiB on 128-MiB parts (v5e/v6e), 48 MiB on v7x."""
    cap = None
    try:
        info = pltpu.get_tpu_info()
        cap = getattr(info, "vmem_capacity_bytes", None)
    except Exception:
        cap = None
    if not cap:
        cap = 64 * 1024 * 1024  # conservative fallback (v7x-sized)
    return int(cap) * 3 // 4


def _itemsize(dt):
    return np.dtype(dt).itemsize


# ----------------------------- Fused path: out = adj @ (x @ W) (+ bias) ------


def _make_fused_kernel(has_bias, cd):
    def kernel(x_ref, w_ref, adj_ref, *rest):
        if has_bias:
            b_ref, o_ref = rest
        else:
            (o_ref,) = rest
        # support for the whole batch element (needed in full for the row tile).
        support = jnp.dot(
            x_ref[...].astype(cd), w_ref[...].astype(cd),
            preferred_element_type=jnp.float32,
        )
        out = jnp.dot(
            adj_ref[...].astype(cd), support.astype(cd),
            preferred_element_type=jnp.float32,
        )
        if has_bias:
            out = out + b_ref[...]
        o_ref[...] = out.astype(o_ref.dtype)

    return kernel


# ----------------------------- Stage 1: support = x @ weight -----------------


def _make_stage1_kernel(cd):
    def kernel(x_ref, w_ref, o_ref, acc_ref):
        k = pl.program_id(2)

        @pl.when(k == 0)
        def _():
            acc_ref[...] = jnp.zeros_like(acc_ref)

        acc_ref[...] += jnp.dot(
            x_ref[...].astype(cd), w_ref[...].astype(cd),
            preferred_element_type=jnp.float32,
        )

        @pl.when(k == pl.num_programs(2) - 1)
        def _():
            o_ref[...] = acc_ref[...].astype(o_ref.dtype)

    return kernel


def _compute_support(x2d, w, *, cd, vmem_limit):
    """x2d: [B*N_p, F_in_p] (orig dtype), w: [F_in_p, F_out_p] (orig dtype)."""
    BN, F_in_p = x2d.shape
    F_out_p = w.shape[1]
    tm = _largest_tile(BN, 1024)
    tn = _largest_tile(F_out_p, 512)
    tk = _largest_tile(F_in_p, 512)

    return pl.pallas_call(
        _make_stage1_kernel(cd),
        out_shape=jax.ShapeDtypeStruct((BN, F_out_p), cd),
        grid_spec=pltpu.PrefetchScalarGridSpec(
            num_scalar_prefetch=0,
            grid=(BN // tm, F_out_p // tn, F_in_p // tk),
            in_specs=[
                pl.BlockSpec((tm, tk), lambda i, j, k: (i, k)),
                pl.BlockSpec((tk, tn), lambda i, j, k: (k, j)),
            ],
            out_specs=pl.BlockSpec((tm, tn), lambda i, j, k: (i, j)),
            scratch_shapes=[pltpu.VMEM((tm, tn), jnp.float32)],
        ),
        compiler_params=pltpu.CompilerParams(
            dimension_semantics=("parallel", "parallel", "arbitrary"),
            vmem_limit_bytes=vmem_limit,
        ),
    )(x2d, w)


# ----------------------------- Stage 2: out = adj @ support (+ bias) ---------


def _make_stage2_kernel(has_bias, resident, tk, cd):
    def kernel(adj_ref, s_ref, *rest):
        if has_bias:
            b_ref, o_ref, acc_ref = rest
        else:
            o_ref, acc_ref = rest
        k = pl.program_id(2)

        @pl.when(k == 0)
        def _():
            acc_ref[...] = jnp.zeros_like(acc_ref)

        if resident:
            # support for the whole batch element is resident in VMEM; take the
            # k-th (tk, F_out_p) slab (tk is a multiple of 128 -> aligned slice).
            off = pl.multiple_of(k * tk, tk)
            s_blk = s_ref[pl.ds(off, tk), :]
        else:
            s_blk = s_ref[...]

        acc_ref[...] += jnp.dot(
            adj_ref[...].astype(cd), s_blk.astype(cd),
            preferred_element_type=jnp.float32,
        )

        @pl.when(k == pl.num_programs(2) - 1)
        def _():
            r = acc_ref[...]
            if has_bias:
                r = r + b_ref[...]
            o_ref[...] = r.astype(o_ref.dtype)

    return kernel


# ----------------------------- Public wrapper ---------------------------------


def graph_convolution(
    x,
    adj,
    weight,
    bias=None,
    *,
    compute_dtype=jnp.bfloat16,
    tile_m=512,
    tile_k=1024,
    _force_two_stage=False,
    _force_streamed_support=False,
):
    """Pallas GCN forward.

    x:      [B, N, F_in]
    adj:    [B, N, N]
    weight: [F_in, F_out]
    bias:   None or [1, 1, F_out] (anything reshapeable to [1, F_out])
    returns [B, N, F_out] in x.dtype
    """
    B, N, F_in = x.shape
    F_out = weight.shape[1]
    out_dtype = x.dtype
    cd = compute_dtype

    F_in_p = _round_up(F_in, 128)
    F_out_p = _round_up(F_out, 128)
    N_p = _round_up(N, 128)

    # Pad (zeros) only when needed, in the ORIGINAL dtype; all casts happen
    # inside the kernels.  Zero padding is exact for this computation.
    if N_p != N or F_in_p != F_in:
        x_p = jnp.pad(x, ((0, 0), (0, N_p - N), (0, F_in_p - F_in)))
    else:
        x_p = x
    if N_p != N:
        adj_p = jnp.pad(adj, ((0, 0), (0, N_p - N), (0, N_p - N)))
    else:
        adj_p = adj
    if F_in_p != F_in or F_out_p != F_out:
        w_p = jnp.pad(weight, ((0, F_in_p - F_in), (0, F_out_p - F_out)))
    else:
        w_p = weight

    has_bias = bias is not None
    bias_p = None
    if has_bias:
        bias_p = jnp.pad(
            jnp.asarray(bias, jnp.float32).reshape(1, F_out),
            ((0, 0), (0, F_out_p - F_out)),
        )

    vmem_limit = _vmem_limit_bytes()
    budget = int(vmem_limit * 0.8)

    xb = _itemsize(x.dtype)
    ab = _itemsize(adj.dtype)
    wb = _itemsize(weight.dtype)
    ob = _itemsize(out_dtype)
    cdb = _itemsize(cd)

    # ---------------- fused fast path (small graphs) ----------------
    # For B == 1 split rows in two so both v7x TensorCores get work (recomputing
    # x @ W twice is negligible for the sizes where this path is selected).
    n_i = 2 if (B == 1 and N_p % 256 == 0) else 1
    tm_f = N_p // n_i
    fused_bytes = (
        2 * N_p * F_in_p * xb          # x block (double-buffered)
        + 2 * F_in_p * F_out_p * wb    # resident weight
        + 2 * tm_f * N_p * ab          # adj row slab
        + 2 * tm_f * F_out_p * ob      # output tile
        + 2 * F_out_p * 4              # bias
        + 3 * N_p * F_out_p * 4        # in-kernel support temporaries (conservative)
    )
    use_fused = (not _force_two_stage) and fused_bytes <= budget

    if use_fused:
        in_specs = [
            pl.BlockSpec((pl.Squeezed(), N_p, F_in_p), lambda b, i: (b, 0, 0)),
            pl.BlockSpec((F_in_p, F_out_p), lambda b, i: (0, 0)),
            pl.BlockSpec((pl.Squeezed(), tm_f, N_p), lambda b, i: (b, i, 0)),
        ]
        args = [x_p, w_p, adj_p]
        if has_bias:
            in_specs.append(pl.BlockSpec((1, F_out_p), lambda b, i: (0, 0)))
            args.append(bias_p)

        out_p = pl.pallas_call(
            _make_fused_kernel(has_bias, cd),
            out_shape=jax.ShapeDtypeStruct((B, N_p, F_out_p), out_dtype),
            grid_spec=pltpu.PrefetchScalarGridSpec(
                num_scalar_prefetch=0,
                grid=(B, n_i),
                in_specs=in_specs,
                out_specs=pl.BlockSpec(
                    (pl.Squeezed(), tm_f, F_out_p), lambda b, i: (b, i, 0)
                ),
            ),
            compiler_params=pltpu.CompilerParams(
                dimension_semantics=("parallel", "parallel"),
                vmem_limit_bytes=vmem_limit,
            ),
        )(*args)
        return out_p[:, :N, :F_out]

    # ---------------- two-stage path ----------------
    # Stage 1: support = x @ W, tiled over (rows, F_out, F_in), stored in cd.
    support = _compute_support(
        x_p.reshape(B * N_p, F_in_p), w_p, cd=cd, vmem_limit=vmem_limit
    ).reshape(B, N_p, F_out_p)

    # Stage 2: out = adj @ support (+ bias), grid (B, rows, k); tiles are exact
    # divisors of N_p, adj streams in its original dtype.
    tm = _largest_tile(N_p, tile_m)
    tk = _largest_tile(N_p, tile_k)

    stage2_fixed = (
        2 * tm * tk * ab + 2 * tm * F_out_p * ob + tm * F_out_p * 4 + 2 * F_out_p * 4
    )
    resident = (not _force_streamed_support) and (
        stage2_fixed + 2 * N_p * F_out_p * cdb <= budget
    )

    if resident:
        s_spec = pl.BlockSpec(
            (pl.Squeezed(), N_p, F_out_p), lambda b, i, k: (b, 0, 0)
        )
    else:
        s_spec = pl.BlockSpec(
            (pl.Squeezed(), tk, F_out_p), lambda b, i, k: (b, k, 0)
        )

    in_specs = [
        pl.BlockSpec((pl.Squeezed(), tm, tk), lambda b, i, k: (b, i, k)),
        s_spec,
    ]
    args = [adj_p, support]
    if has_bias:
        in_specs.append(pl.BlockSpec((1, F_out_p), lambda b, i, k: (0, 0)))
        args.append(bias_p)

    out_p = pl.pallas_call(
        _make_stage2_kernel(has_bias, resident, tk, cd),
        out_shape=jax.ShapeDtypeStruct((B, N_p, F_out_p), out_dtype),
        grid_spec=pltpu.PrefetchScalarGridSpec(
            num_scalar_prefetch=0,
            grid=(B, N_p // tm, N_p // tk),
            in_specs=in_specs,
            out_specs=pl.BlockSpec(
                (pl.Squeezed(), tm, F_out_p), lambda b, i, k: (b, i, 0)
            ),
            scratch_shapes=[pltpu.VMEM((tm, F_out_p), jnp.float32)],
        ),
        compiler_params=pltpu.CompilerParams(
            dimension_semantics=("parallel", "parallel", "arbitrary"),
            vmem_limit_bytes=vmem_limit,
        ),
    )(*args)

    return out_p[:, :N, :F_out]


def init_gcn_params(key, in_features, out_features, bias=False):
    """Deterministic init mirroring GraphConvolution.reset_parameters."""
    stdv = 1.0 / math.sqrt(out_features)
    kw, kb = jax.random.split(key)
    weight = jax.random.uniform(
        kw, (in_features, out_features), jnp.float32, minval=-stdv, maxval=stdv
    )
    if bias:
        b = jax.random.uniform(
            kb, (1, 1, out_features), jnp.float32, minval=-stdv, maxval=stdv
        )
    else:
        b = None
    return weight, b


if __name__ == "__main__":
    key = jax.random.PRNGKey(0)
    k_x, k_adj, k_p = jax.random.split(key, 3)

    # Small shapes; F_in / F_out intentionally NOT 128-aligned to exercise padding.
    B, N, F_in, F_out = 2, 256, 96, 64

    x = jax.random.normal(k_x, (B, N, F_in), jnp.float32)
    adj_raw = jax.random.uniform(k_adj, (B, N, N), jnp.float32)
    adj = adj_raw / jnp.sum(adj_raw, axis=-1, keepdims=True)
    weight, bias = init_gcn_params(k_p, F_in, F_out, bias=True)

    hi = jax.lax.Precision.HIGHEST
    ref = jnp.matmul(adj, jnp.matmul(x, weight, precision=hi), precision=hi) + bias

    # 1) fused fast path, f32 compute: tight check.
    out = jax.block_until_ready(
        graph_convolution(x, adj, weight, bias, compute_dtype=jnp.float32)
    )
    assert out.shape == (B, N, F_out)
    assert jnp.allclose(out, ref, atol=1e-3, rtol=1e-3)

    # 2) fused fast path, default bf16 streaming: loose tolerance.
    out_bf = jax.block_until_ready(graph_convolution(x, adj, weight, bias))
    assert out_bf.shape == (B, N, F_out)
    assert jnp.allclose(out_bf, ref, atol=3e-2, rtol=3e-2)

    # 3) two-stage path with resident support, f32.
    out2 = jax.block_until_ready(
        graph_convolution(
            x, adj, weight, bias, compute_dtype=jnp.float32, _force_two_stage=True
        )
    )
    assert jnp.allclose(out2, ref, atol=1e-3, rtol=1e-3)

    # 4) two-stage path with k-streamed support (large-N fallback), f32.
    out3 = jax.block_until_ready(
        graph_convolution(
            x, adj, weight, bias, compute_dtype=jnp.float32,
            _force_two_stage=True, _force_streamed_support=True,
        )
    )
    assert jnp.allclose(out3, ref, atol=1e-3, rtol=1e-3)

    # 5) bias=False (module default), B=1 (exercises the fused row-split path).
    x1, adj1 = x[:1], adj[:1]
    ref_nb = jnp.matmul(adj1, jnp.matmul(x1, weight, precision=hi), precision=hi)
    out_nb = jax.block_until_ready(
        graph_convolution(x1, adj1, weight, None, compute_dtype=jnp.float32)
    )
    assert jnp.allclose(out_nb, ref_nb, atol=1e-3, rtol=1e-3)
    out_nb2 = jax.block_until_ready(
        graph_convolution(
            x1, adj1, weight, None, compute_dtype=jnp.float32, _force_two_stage=True
        )
    )
    assert jnp.allclose(out_nb2, ref_nb, atol=1e-3, rtol=1e-3)

    # 6) non-128-aligned N: exercises the minimal, original-dtype zero padding.
    N2 = 200
    x2 = x[:, :N2]
    adj2 = adj[:, :N2, :N2]
    adj2 = adj2 / jnp.sum(adj2, axis=-1, keepdims=True)
    ref2 = jnp.matmul(adj2, jnp.matmul(x2, weight, precision=hi), precision=hi) + bias
    out6 = jax.block_until_ready(
        graph_convolution(x2, adj2, weight, bias, compute_dtype=jnp.float32)
    )
    assert out6.shape == (B, N2, F_out)
    assert jnp.allclose(out6, ref2, atol=1e-3, rtol=1e-3)

    print("KERNEL_OK")
</pallas_src>

<mosaic_0001>
module attributes {stable_mosaic.version = 11 : i64} {
  func.func @kernel(%arg0: i32, %arg1: i32, %arg2: memref<1x256x128xf32, #tpu.memory_space<vmem>>, %arg3: memref<128x128xf32, #tpu.memory_space<vmem>>, %arg4: memref<1x256x256xf32, #tpu.memory_space<vmem>>, %arg5: memref<1x128xf32, #tpu.memory_space<vmem>>, %arg6: memref<1x256x128xf32, #tpu.memory_space<vmem>>) attributes {dimension_semantics = [#tpu.dimension_semantics<parallel>, #tpu.dimension_semantics<parallel>], iteration_bounds = array<i64: 2, 1>, scalar_prefetch = 0 : i64, scratch_operands = 0 : i64, tpu.core_type = #tpu.core_type<tc>, window_params = [{transform_indices = @transform_0, window_bounds = array<i64: 1, 256, 128>}, {pipeline_mode = #tpu.pipeline_mode<synchronous>, transform_indices = @transform_1, window_bounds = array<i64: 128, 128>}, {transform_indices = @transform_2, window_bounds = array<i64: 1, 256, 256>}, {pipeline_mode = #tpu.pipeline_mode<synchronous>, transform_indices = @transform_3, window_bounds = array<i64: 1, 128>}, {transform_indices = @transform_4, window_bounds = array<i64: 1, 256, 128>}]} {
    %c0 = arith.constant 0 : index
    %c0_0 = arith.constant 0 : index
    %c0_1 = arith.constant 0 : index
    %0 = vector.load %arg2[%c0, %c0_0, %c0_1] : memref<1x256x128xf32, #tpu.memory_space<vmem>>, vector<1x256x128xf32>
    %1 = vector.shape_cast %0 : vector<1x256x128xf32> to vector<256x128xf32>
    %c0_2 = arith.constant 0 : index
    %c0_3 = arith.constant 0 : index
    %2 = vector.load %arg3[%c0_2, %c0_3] : memref<128x128xf32, #tpu.memory_space<vmem>>, vector<128x128xf32>
    %cst = arith.constant dense<0.000000e+00> : vector<256x128xf32>
    %3 = tpu.matmul %1, %2, %cst {dimension_numbers = #tpu.dot_dimension_numbers<[1], [0], [0], [1], [0, 0, 1, 1], [], []>} : vector<256x128xf32>, vector<128x128xf32>, vector<256x128xf32> -> vector<256x128xf32>
    %c0_4 = arith.constant 0 : index
    %c0_5 = arith.constant 0 : index
    %c0_6 = arith.constant 0 : index
    %4 = vector.load %arg4[%c0_4, %c0_5, %c0_6] : memref<1x256x256xf32, #tpu.memory_space<vmem>>, vector<1x256x256xf32>
    %5 = vector.shape_cast %4 : vector<1x256x256xf32> to vector<256x256xf32>
    %cst_7 = arith.constant dense<0.000000e+00> : vector<256x128xf32>
    %6 = tpu.matmul %5, %3, %cst_7 {dimension_numbers = #tpu.dot_dimension_numbers<[1], [0], [0], [1], [0, 0, 1, 1], [], []>} : vector<256x256xf32>, vector<256x128xf32>, vector<256x128xf32> -> vector<256x128xf32>
    %c0_8 = arith.constant 0 : index
    %c0_9 = arith.constant 0 : index
    %7 = vector.load %arg5[%c0_8, %c0_9] : memref<1x128xf32, #tpu.memory_space<vmem>>, vector<1x128xf32>
    %8 = vector.broadcast %7 : vector<1x128xf32> to vector<256x128xf32>
    %9 = arith.addf %6, %8 : vector<256x128xf32>
    %c0_10 = arith.constant 0 : index
    %c0_11 = arith.constant 0 : index
    %c0_12 = arith.constant 0 : index
    %10 = vector.load %arg6[%c0_10, %c0_11, %c0_12] : memref<1x256x128xf32, #tpu.memory_space<vmem>>, vector<1x256x128xf32>
    %11 = vector.shape_cast %10 : vector<1x256x128xf32> to vector<256x128xf32>
    %12 = vector.shape_cast %9 : vector<256x128xf32> to vector<1x256x128xf32>
    tpu.vector_store %arg6[%c0_10, %c0_11, %c0_12], %12 {strides = array<i32>} : memref<1x256x128xf32, #tpu.memory_space<vmem>>, vector<1x256x128xf32>,
    return
  }
  func.func @transform_0(%arg0: i32, %arg1: i32) -> (i32, i32, i32) {
    %c0_i32 = arith.constant 0 : i32
    %c0_i32_0 = arith.constant 0 : i32
    %c0_i32_1 = arith.constant 0 : i32
    return %arg0, %c0_i32, %c0_i32_0 : i32, i32, i32
  }
  func.func @transform_1(%arg0: i32, %arg1: i32) -> (i32, i32) {
    %c0_i32 = arith.constant 0 : i32
    %c0_i32_0 = arith.constant 0 : i32
    %c0_i32_1 = arith.constant 0 : i32
    return %c0_i32, %c0_i32_0 : i32, i32
  }
  func.func @transform_2(%arg0: i32, %arg1: i32) -> (i32, i32, i32) {
    %c0_i32 = arith.constant 0 : i32
    %c0_i32_0 = arith.constant 0 : i32
    return %arg0, %arg1, %c0_i32 : i32, i32, i32
  }
  func.func @transform_3(%arg0: i32, %arg1: i32) -> (i32, i32) {
    %c0_i32 = arith.constant 0 : i32
    %c0_i32_0 = arith.constant 0 : i32
    %c0_i32_1 = arith.constant 0 : i32
    return %c0_i32, %c0_i32_0 : i32, i32
  }
  func.func @transform_4(%arg0: i32, %arg1: i32) -> (i32, i32, i32) {
    %c0_i32 = arith.constant 0 : i32
    %c0_i32_0 = arith.constant 0 : i32
    return %arg0, %arg1, %c0_i32 : i32, i32, i32
  }
}

</mosaic_0001>

<bundles_post_ra>
// kernel: tpu_custom_call.1
= control target key start
LH: loop header
LB: loop body
LE: loop exit
PB: predicated region body
PF: predicated region fallthrough
CT: control target
= control target key end

     0   :  { %s2070_s0 = inlined_call_operand.hbm [shape: f32[2,256,128], index: 0, kind: input, shape index: {}]   ;;  %s2071_s1 = inlined_call_operand.hbm [shape: f32[128,128], index: 1, kind: input, shape index: {}]   ;;  %s2072_s2 = inlined_call_operand.hbm [shape: f32[2,256,256], index: 2, kind: input, shape index: {}]   ;;  %s2073_s3 = inlined_call_operand.vmem [shape: f32[1,128], index: 3, kind: input, shape index: {}]   ;;  %s2074_s4 = inlined_call_operand.hbm [shape: f32[2,256,128], index: 4, kind: output, shape index: {}]  }
   0x1   :  { %2082 = sst [smem:[#allocation14_spill]] %s2070_s0 }
   0x2   :  { %2083 = sst [smem:[#allocation15_spill]] %s2072_s2 }
   0x3   :  { %9 = vsyncpa [#allocation3], 0 }
   0x4   :  { %11 = vsyncpa [#allocation3 + $0x1], 0 }
   0x5   :  { %12 = vsyncpa [#allocation6], 0 }
   0x6   :  { %13 = vsyncpa [#allocation4], 0 }
   0x7   :  { %15 = vsyncpa [#allocation4 + $0x1], 0  ;;  %s1589_s15 = smov 0   ;;  %s1591_s16 = smov 0  }
   0x8   :  { %s1593_s17 = smov 0   ;;  %s1595_s18 = smov 0  }
   0x9   :  { %s1597_s19 = smov 0   ;;  %s1599_s20 = smov 0  }
   0xa LB: > { %s33_s21 = sadd.s32 1, %s1547_s19  ;;  %s40_s22 = sadd.s32 1, %s1539_s17  ;;  %s1551_s20 = sphi %s1599_s20, %s21_s20   ;;  %s1547_s19 = sphi %s1597_s19, %s2108_s19   ;;  %s1543_s18 = sphi %s1595_s18, %s2107_s18   ;;  %s1539_s17 = sphi %s1593_s17, %s2106_s17   ;;  %s1535_s16 = sphi %s1591_s16, %s2105_s16   ;;  %s1531_s15 = sphi %s1589_s15, %s2104_s15  }
   0xb   : > { %p35_p0 = scmp.ge.s32.totalorder %s33_s21, 2  ;;  %p47_p1 = scmp.ne.s32.totalorder %s1539_s17, %s1535_s16 }
   0xc   : > { %p48_p2 = scmp.eq.s32.totalorder %s1551_s20, 0  ;;  %p1314_p6 = scmp.lt.s32.totalorder %s1551_s20, 2 }
   0xd   : > { %s2110_s21 = smov (%p35_p0, %s33_s21), 0  ;;  %s191_s25 = sand.u32 1, %s1551_s20  }
   0xe   : > { %2084 = sst [smem:[#allocation13_spill]] %s2110_s21  ;;  %p1629_p3 = por %p48_p2, %p47_p1 }
   0xf   : > { %s37_s24 = ssub.s32 %s1547_s19, %s2110_s21  ;;  %s193_s26 = sand.u32 1, %s1539_s17  }
  0x10   : > { %p38_p5 = scmp.eq.s32.totalorder %s37_s24, 0  ;;  %s1028_s28 = sshll.u32 %s193_s26, 8 }
  0x11   : > { %s1045_s29 = sshll.u32 %s1547_s19, 12  ;;  %s2086_s0 = sld [smem:[#allocation14_spill]] }
  0x12   : > { %s1640_s27 = scalar_select %p38_p5, %s1539_s17, %s40_s22  }
  0x13   : > { %s195_s7 = scalar_lea.vmem [#allocation2], %s1028_s28  ;;  %p1652_p7 = pnand %p1314_p6, %p1629_p3 }
  0x14   : > { %s202_s8 = sshll.u32 %s195_s7, 4  ;;  %s1656_s10 = sshll.u32 %s193_s26, 9  ;;  %s1648_s8 = int_to_ptr.vmem [resolvable:$true] %s202_s8 }
  0x15   : > { %s1658_s11 = scalar_lea.sflag [#allocation3], %s191_s25  ;;  %p1375_p9 = pneg %p1652_p7 }
  0x17   : > { %s1646_s6 = scalar_lea.hbm %s2086_s0, %s1045_s29  ;;  %s1378_s22 = scalar_lea.hbm %s2086_s0, 8192 }
  0x18   : > { %s1373_s12 = scalar_lea.hbm %s1646_s6, 4096  ;;  %p1379_p12 = scmp.lt.u32.totalorder %s1646_s6, %s2086_s0 }
  0x19   : > { %p1374_p8 = scmp.ne.s32.totalorder %s1646_s6, %s1373_s12  ;;  %p1380_p13 = scmp.lt.u32.totalorder %s1378_s22, %s1373_s12 }
  0x1a   : > { %p1382_p2 = scmp.lt.u32.totalorder %s1373_s12, %s1646_s6 }
  0x1b   : > { %p1376_p10 = pnand %p1375_p9, %p1374_p8  ;;  %p1381_p0 = por %p1380_p13, %p1379_p12 }
  0x1d   : > { %p1377_p11 = pneg %p1376_p10  ;;  %p1383_p3 = por %p1382_p2, %p1381_p0 }
  0x1f   : > { %p1384_p5 = pnand %p1383_p3, %p1377_p11 }
  0x21   : > { %1387 = shalt.err (!%p1384_p5)
}
  0x22   : > { %s1388_s25 = scalar_lea.vmem %s1648_s8, 4096  ;;  %s1553_s26 = smov [#allocation2]  }
  0x23   : > { %p1389_p6 = scmp.ne.s32.totalorder %s1648_s8, %s1388_s25  ;;  %s1393_s28 = sshll.u32 %s1553_s26, 4  ;;  %s1394_s28 = int_to_ptr.vmem [resolvable:$false] %s1393_s28 }
  0x24   : > { %s1395_s29 = scalar_lea.vmem %s1394_s28, 8192  ;;  %p1396_p4 = scmp.lt.s32.totalorder %s1648_s8, %s1394_s28 }
  0x25   : > { %p1391_p8 = pnand %p1389_p6, %p1375_p9  ;;  %p1397_p12 = scmp.lt.s32.totalorder %s1395_s29, %s1388_s25 }
  0x27   : > { %p1392_p10 = pneg %p1391_p8  ;;  %p1398_p13 = por %p1397_p12, %p1396_p4 }
  0x29   : > { %p1399_p0 = pnand %p1398_p13, %p1392_p10 }
  0x2b   : > { %1402 = shalt.err (!%p1399_p0)
}
  0x2c   : > { %s2075_s30 = smov 128   ;;  %s2078_s5 = smov 8  }
  0x2d   : > { %1305 = dma.hbm_to_vmem [thread:$0]  (!%p1652_p7), %s1646_s6, 4096, %s1648_s8, %s1658_s11, %s2075_s30, %s2075_s30, %s2078_s5  }
  0x2e   : > { %s216_s7 = scalar_lea.vmem [#allocation7], %s1656_s10  ;;  %s1691_s13 = sadd.s32 4294967295, %s1551_s20  }
  0x2f   : > { %s226_s12 = sshll.u32 %s216_s7, 4  ;;  %s1024_s14 = sadd.s32 4294967294, %s1551_s20   ;;  %s1729_s12 = int_to_ptr.vmem [resolvable:$true] %s226_s12 }
  0x30   : > { %p53_p4 = scmp.ne.s32.totalorder %s1535_s16, %s1531_s15  ;;  %p2076_p11 = scmp.eq.s32.totalorder %s1691_s13, 0 }
  0x31   : > { %p149_p2 = scmp.eq.s32.totalorder %s1691_s13, 1  ;;  %p155_p3 = scmp.eq.s32.totalorder %s1024_s14, 1 }
  0x32   : > { %p1700_p5 = por %p2076_p11, %p53_p4  ;;  %p1025_p6 = scmp.ge.s32.totalorder %s1551_s20, 1 }
  0x33   : > { %p1708_p8 = por %p149_p2, %p47_p1  ;;  %p1712_p10 = por %p155_p3, %p53_p4 }
  0x34   : > { %s2088_s22 = scalar_select %p1700_p5, 1, 0 }
  0x35   : > { %s2089_s6 = scalar_select %p1708_p8, 1, 0 }
  0x36   : > { %s2090_s8 = scalar_select %p1712_p10, 1, 0 }
  0x37   : > { %p162_p12 = scmp.lt.s32.totalorder %s1551_s20, 3  ;;  %s1046_s10 = sshll.u32 %s1547_s19, 13 }
  0x38   : > { %s1556_s24 = smov [#allocation5]   ;;  %s2092_s2 = sld [smem:[#allocation15_spill]] }
  0x39   : > { %p1718_p13 = pnand %p1025_p6, %p162_p12  ;;  %s174_s25 = sshll.u32 %s1556_s24, 4  ;;  %s1731_s25 = int_to_ptr.vmem [resolvable:$true] %s174_s25 }
  0x3b   : > { %s2091_s23 = scalar_select %p1718_p13, 1, 0 }
  0x3c   : > { %p1298_p1 = pneg %p1718_p13 }
  0x3e   : > { %s1725_s29 = scalar_lea.hbm %s2092_s2, %s1046_s10  ;;  %p1735_p0 = pnand %p1298_p1, %p2076_p11 }
  0x3f   : > { %s1403_s14 = scalar_lea.hbm %s1725_s29, 8192  ;;  %s1408_s26 = scalar_lea.hbm %s2092_s2, 16384 }
  0x40   : > { %p1404_p4 = scmp.ne.s32.totalorder %s1725_s29, %s1403_s14  ;;  %p1409_p6 = scmp.lt.u32.totalorder %s1725_s29, %s2092_s2 }
  0x41   : > { %p1410_p12 = scmp.lt.u32.totalorder %s1408_s26, %s1403_s14  ;;  %p1412_p1 = scmp.lt.u32.totalorder %s1403_s14, %s1725_s29 }
  0x42   : > { %p1406_p2 = pnand %p1404_p4, %p1375_p9 }
  0x43   : > { %p1411_p10 = por %p1410_p12, %p1409_p6 }
  0x44   : > { %p1407_p3 = pneg %p1406_p2 }
  0x45   : > { %p1413_p11 = por %p1412_p1, %p1411_p10 }
  0x47   : > { %p1414_p8 = pnand %p1413_p11, %p1407_p3 }
  0x49   : > { %1417 = shalt.err (!%p1414_p8)
}
  0x4a   : > { %s1418_s5 = scalar_lea.vmem %s1729_s12, 8192  ;;  %s1557_s10 = smov [#allocation7]  }
  0x4b   : > { %p1419_p4 = scmp.ne.s32.totalorder %s1729_s12, %s1418_s5  ;;  %s1423_s24 = sshll.u32 %s1557_s10, 4  ;;  %s1424_s24 = int_to_ptr.vmem [resolvable:$false] %s1423_s24 }
  0x4c   : > { %s1425_s30 = scalar_lea.vmem %s1424_s24, 16384  ;;  %p1426_p13 = scmp.lt.s32.totalorder %s1729_s12, %s1424_s24 }
  0x4d   : > { %p1421_p2 = pnand %p1419_p4, %p1375_p9  ;;  %p1427_p6 = scmp.lt.s32.totalorder %s1425_s30, %s1418_s5 }
  0x4f   : > { %p1422_p5 = pneg %p1421_p2  ;;  %p1428_p12 = por %p1427_p6, %p1426_p13 }
  0x51   : > { %p1429_p10 = pnand %p1428_p12, %p1422_p5 }
  0x53   : > { %1432 = shalt.err (!%p1429_p10)
}
  0x54   : > { %s1558_s14 = smov 256   ;;  %s1559_s26 = smov 16  }
  0x55   : > { %1308 = dma.hbm_to_vmem [thread:$0]  (!%p1652_p7), %s1725_s29, 8192, %s1729_s12, %s1658_s11, %s1558_s14, %s1558_s14, %s1559_s26  }
  0x56   : > { %s1433_s10 = scalar_lea.hbm %s2071_s1, 2048  ;;  %p1435_p11 = pneg %p1735_p0 }
  0x57   : > { %p1434_p9 = scmp.ne.s32.totalorder %s2071_s1, %s1433_s10  ;;  %p1440_p13 = scmp.lt.u32.totalorder %s1433_s10, %s2071_s1 }
  0x59   : > { %p1436_p5 = pnand %p1435_p11, %p1434_p9 }
  0x5b   : > { %p1437_p8 = pneg %p1436_p5 }
  0x5d   : > { %p1442_p3 = pnand %p1440_p13, %p1437_p8 }
  0x5f   : > { %1445 = shalt.err (!%p1442_p3)
}
  0x60   : > { %s1446_s9 = scalar_lea.vmem %s1731_s25, 2048  ;;  %p1454_p2 = scmp.lt.s32.totalorder %s1731_s25, %s1731_s25 }
  0x61   : > { %p1447_p7 = scmp.ne.s32.totalorder %s1731_s25, %s1446_s9  ;;  %p1455_p6 = scmp.lt.s32.totalorder %s1446_s9, %s1446_s9 }
  0x63   : > { %p1449_p1 = pnand %p1447_p7, %p1435_p11  ;;  %p1456_p12 = por %p1455_p6, %p1454_p2 }
  0x65   : > { %p1450_p4 = pneg %p1449_p1 }
  0x67   : > { %p1457_p10 = pnand %p1456_p12, %p1450_p4 }
  0x69   : > { %1460 = shalt.err (!%p1457_p10)
}
  0x6a   : > { %s2094_s0 = smov 8   ;;  %s2095_s2 = smov 128  }
  0x6b   : > { %1301 = dma.hbm_to_vmem [thread:$0]  (!%p1735_p0), %s2071_s1, 2048, %s1731_s25, [#allocation6], %s2095_s2, %s2095_s2, %s2094_s0  }
  0x6c   : > { %p2096_p9 = scmp.ne.s32.totalorder %s2091_s23, 0 }
  0x6d   : > { %s240_s12 = sand.u32 (!%p2096_p9), 1, %s1691_s13   ;;  %s1791_s29 = sand.u32 (!%p2096_p9), 1, %s1535_s16  }
  0x6e   : > { %238 = sbr.rel (%p2096_p9) target bundleno = 742 (0x2e6), region = 36  ;;  %s1035_s7 = sshll.u32 (!%p2096_p9), %s1791_s29, 8 }
  0x6f   : > { %s241_s30 = scalar_lea.sflag (!%p2096_p9), [#allocation3], %s240_s12  ;;  %s1796_s14 = scalar_lea.vmem (!%p2096_p9), [#allocation2], %s1035_s7 }
  0x70   : > { %p2097_p11 = scmp.ne.s32.totalorder (!%p2096_p9), %s2088_s22, 0 }
  0x75   : > { %1514 = dma.done.wait (%p2097_p11), %s241_s30, 4096  }
  0x76   : > { %1516 = vsyncadd (%p2097_p11), %s241_s30, 4294963200  ;;  %p2098_p0 = scmp.eq.s32.totalorder %s1691_s13, 0 }
  0x78   : > { %1518 = dma.done.wait (%p2098_p0), [#allocation6], 2048   ;;  %p2099_p5 = pmov %p2098_p0 }
  0x79   : > { %s1037_s23 = sshll.u32 %s1791_s29, 9 }
  0x7a   : > { %1520 = vsyncadd (%p2099_p5), [#allocation6], 4294965248  ;;  %s1807_s25 = scalar_lea.vmem [#allocation7], %s1037_s23 }
  0x7b   : > { %1522 = dma.done.wait (%p2097_p11), %s241_s30, 8192  }
  0x7c   : > { %1524 = vsyncadd (%p2097_p11), %s241_s30, 4294959104  ;;  %v321_v0 = vld [vmem:[#allocation5] sm:$0xff]  ;;  %v322_v1 = vld [vmem:[#allocation5 + $0x8] sm:$0xff]  ;;  %v1560_v56 = vmov 0.0|0.0   ;;  %s1950_s26 = scalar_lea.vmem [#allocation8], %s1035_s7  ;;  %s1047_s28 = sshll.u32 %s1543_s18, 12 }
  0x7d   : > { %v323_v2 = vld [vmem:[#allocation5 + $0x10] sm:$0xff]  ;;  %v1176_v3 = vpack.c.bf16 %v322_v1, %v321_v0  ;;  %v324_v4 = vld [vmem:[#allocation5 + $0x18] sm:$0xff]  ;;  %v325_v6 = vld [vmem:[#allocation5 + $0x20] sm:$0xff]  ;;  %1256 = vmatprep.subr.bf16.mxu1 %v1560_v56  ;;  %s906_s10 = sshll.u32 %s1950_s26, 4  ;;  %s2017_s9 = scalar_lea.hbm %s2074_s4, %s1047_s28  ;;  %s2019_s10 = int_to_ptr.vmem [resolvable:$true] %s906_s10 }
  0x7e   : > { %v1180_v5 = vpack.c.bf16 %v324_v4, %v323_v2  ;;  %v326_v7 = vld [vmem:[#allocation5 + $0x28] sm:$0xff]  ;;  %v289_v9 = vld [vmem:[%s1796_s14] sm:$0xff]  ;;  %v327_v10 = vld [vmem:[#allocation5 + $0x30] sm:$0xff]  ;;  %s891_s0 = scalar_lea.sflag [#allocation4], %s1791_s29  ;;  %s1461_s2 = scalar_lea.vmem %s2019_s10, 4096 }
  0x7f   : > { %1177 = vmatprep.subr.bf16.mxu0 %v1176_v3  ;;  %v1184_v8 = vpack.c.bf16 %v326_v7, %v325_v6  ;;  %v328_v11 = vld [vmem:[#allocation5 + $0x38] sm:$0xff]  ;;  %1128 = vmatprep.mubr.f32.mxu0 %v289_v9  ;;  %v329_v13 = vld [vmem:[#allocation5 + $0x40] sm:$0xff]  ;;  %v330_v14 = vld [vmem:[#allocation5 + $0x48] sm:$0xff]  ;;  %p1462_p8 = scmp.ne.s32.totalorder %s2019_s10, %s1461_s2  ;;  %p2100_p13 = scmp.ne.s32.totalorder %s2089_s6, 0 }
  0x80   : > { %1179 = vmatpush3.bf16.msra.mxu0 %v1176_v3  ;;  %v1188_v12 = vpack.c.bf16 %v328_v11, %v327_v10  ;;  %v1192_v15 = vpack.c.bf16 %v330_v14, %v329_v13  ;;  %v331_v16 = vld [vmem:[#allocation5 + $0x50] sm:$0xff]  ;;  %v332_v17 = vld [vmem:[#allocation5 + $0x58] sm:$0xff]  ;;  %v333_v19 = vld [vmem:[#allocation5 + $0x60] sm:$0xff]  ;;  %s1561_s18 = smov [#allocation8]  }
  0x81   : > { %1181 = vmatprep.subr.bf16.mxu0 %v1180_v5  ;;  %v1196_v18 = vpack.c.bf16 %v332_v17, %v331_v16  ;;  %v334_v20 = vld [vmem:[#allocation5 + $0x68] sm:$0xff]  ;;  %v335_v22 = vld [vmem:[#allocation5 + $0x70] sm:$0xff]  ;;  %v336_v23 = vld [vmem:[#allocation5 + $0x78] sm:$0xff]  ;;  %p1463_p3 = pnand %p1462_p8, %p2100_p13  ;;  %s1465_s21 = sshll.u32 %s1561_s18, 4  ;;  %s1466_s21 = int_to_ptr.vmem [resolvable:$false] %s1465_s21 }
  0x82   : > { %v1200_v21 = vpack.c.bf16 %v334_v20, %v333_v19  ;;  %v1204_v24 = vpack.c.bf16 %v336_v23, %v335_v22  ;;  %v290_v25 = vld [vmem:[%s1796_s14 + $0x8] sm:$0xff]  ;;  %v291_v26 = vld [vmem:[%s1796_s14 + $0x10] sm:$0xff]  ;;  %v292_v27 = vld [vmem:[%s1796_s14 + $0x18] sm:$0xff]  ;;  %s1467_s11 = scalar_lea.vmem %s1466_s21, 8192  ;;  %p1468_p1 = scmp.lt.s32.totalorder %s2019_s10, %s1466_s21 }
  0x83   : > { %v293_v28 = vld [vmem:[%s1796_s14 + $0x20] sm:$0xff]  ;;  %v294_v29 = vld [vmem:[%s1796_s14 + $0x28] sm:$0xff]  ;;  %v295_v30 = vld [vmem:[%s1796_s14 + $0x30] sm:$0xff]  ;;  %p1464_p7 = pneg %p1463_p3  ;;  %p1469_p4 = scmp.lt.s32.totalorder %s1467_s11, %s1461_s2 }
  0x84   : > { %1183 = vmatpush3.bf16.msra.mxu0 %v1180_v5  ;;  %v296_v31 = vld [vmem:[%s1796_s14 + $0x38] sm:$0xff]  ;;  %v297_v32 = vld [vmem:[%s1796_s14 + $0x40] sm:$0xff]  ;;  %v298_v33 = vld [vmem:[%s1796_s14 + $0x48] sm:$0xff] }
  0x85   : > { %1185 = vmatprep.subr.bf16.mxu0 %v1184_v8  ;;  %v299_v34 = vld [vmem:[%s1796_s14 + $0x50] sm:$0xff]  ;;  %v300_v35 = vld [vmem:[%s1796_s14 + $0x58] sm:$0xff]  ;;  %v301_v36 = vld [vmem:[%s1796_s14 + $0x60] sm:$0xff]  ;;  %p1470_p2 = por %p1469_p4, %p1468_p1 }
  0x86   : > { %v302_v37 = vld [vmem:[%s1796_s14 + $0x68] sm:$0xff]  ;;  %v303_v38 = vld [vmem:[%s1796_s14 + $0x70] sm:$0xff]  ;;  %v304_v39 = vld [vmem:[%s1796_s14 + $0x78] sm:$0xff] }
  0x87   : > { %v305_v40 = vld [vmem:[%s1796_s14 + $0x80] sm:$0xff]  ;;  %v306_v41 = vld [vmem:[%s1796_s14 + $0x88] sm:$0xff]  ;;  %v307_v42 = vld [vmem:[%s1796_s14 + $0x90] sm:$0xff]  ;;  %p1471_p6 = pnand %p1470_p2, %p1464_p7 }
  0x88   : > { %1187 = vmatpush3.bf16.msra.mxu0 %v1184_v8  ;;  %v308_v43 = vld [vmem:[%s1796_s14 + $0x98] sm:$0xff]  ;;  %v309_v44 = vld [vmem:[%s1796_s14 + $0xa0] sm:$0xff]  ;;  %v310_v45 = vld [vmem:[%s1796_s14 + $0xa8] sm:$0xff] }
  0x89   : > { %1189 = vmatprep.subr.bf16.mxu0 %v1188_v12  ;;  %v311_v46 = vld [vmem:[%s1796_s14 + $0xb0] sm:$0xff]  ;;  %v312_v47 = vld [vmem:[%s1796_s14 + $0xb8] sm:$0xff]  ;;  %v313_v48 = vld [vmem:[%s1796_s14 + $0xc0] sm:$0xff] }
  0x8a   : > { %v314_v49 = vld [vmem:[%s1796_s14 + $0xc8] sm:$0xff]  ;;  %v315_v50 = vld [vmem:[%s1796_s14 + $0xd0] sm:$0xff]  ;;  %v316_v51 = vld [vmem:[%s1796_s14 + $0xd8] sm:$0xff] }
  0x8b   : > { %v317_v52 = vld [vmem:[%s1796_s14 + $0xe0] sm:$0xff]  ;;  %v318_v53 = vld [vmem:[%s1796_s14 + $0xe8] sm:$0xff]  ;;  %v319_v54 = vld [vmem:[%s1796_s14 + $0xf0] sm:$0xff] }
  0x8c   : > { %1191 = vmatpush3.bf16.msra.mxu0 %v1188_v12  ;;  %v320_v55 = vld [vmem:[%s1796_s14 + $0xf8] sm:$0xff]  ;;  %v587_v57 = vld [vmem:[%s1807_s25 + $0xc8] sm:$0xff] }
  0x8d   : > { %1193 = vmatprep.subr.bf16.mxu0 %v1192_v15  ;;  %757 = vmatprep.mubr.f32.mxu1 %v587_v57  ;;  %v563_v58 = vld [vmem:[%s1807_s25 + $0x8] sm:$0xff] }
  0x8e   : > { %v595_v57 = vld [vmem:[%s1807_s25 + $0x108] sm:$0xff] }
  0x90   : > { %1195 = vmatpush3.bf16.msra.mxu0 %v1192_v15 }
  0x91   : > { %1197 = vmatprep.subr.bf16.mxu0 %v1196_v18 }
  0x94   : > { %1199 = vmatpush3.bf16.msra.mxu0 %v1196_v18 }
  0x95   : > { %1201 = vmatprep.subr.bf16.mxu0 %v1200_v21 }
  0x98   : > { %1203 = vmatpush3.bf16.msra.mxu0 %v1200_v21 }
  0x99   : > { %1205 = vmatprep.subr.bf16.mxu0 %v1204_v24 }
  0x9c   : > { %1207 = vmatpush3.bf16.msra.mxu0 %v1204_v24 }
  0x9d   : > { %1208 = vmatprep.subr.bf16.mxu0 %v1560_v56 }
  0x9f   : > { %1129 = vmatmul.mubr.f32.vlgmr.msra.gmra.mrb[0].mxu0 %v290_v25 }
  0xa0   : > { %1131 = vmatprep.mubr.f32.mxu0 %v291_v26 }
  0xa3   : > { %1132 = vmatmul.mubr.f32.gmra.mrb[2].mxu0 %v292_v27 }
  0xa4   : > { %1134 = vmatprep.mubr.f32.mxu0 %v293_v28 }
  0xa7   : > { %1135 = vmatmul.mubr.f32.gmra.mrb[4].mxu0 %v294_v29 }
  0xa8   : > { %1137 = vmatprep.mubr.f32.mxu0 %v295_v30 }
  0xab   : > { %1138 = vmatmul.mubr.f32.gmra.mrb[6].mxu0 %v296_v31 }
  0xac   : > { %1140 = vmatprep.mubr.f32.mxu0 %v297_v32 }
  0xaf   : > { %1141 = vmatmul.mubr.f32.gmra.mrb[8].mxu0 %v298_v33 }
  0xb0   : > { %1143 = vmatprep.mubr.f32.mxu0 %v299_v34 }
  0xb3   : > { %1144 = vmatmul.mubr.f32.gmra.mrb[10].mxu0 %v300_v35 }
  0xb4   : > { %1146 = vmatprep.mubr.f32.mxu0 %v301_v36 }
  0xb7   : > { %1147 = vmatmul.mubr.f32.gmra.mrb[12].mxu0 %v302_v37 }
  0xb8   : > { %1149 = vmatprep.mubr.f32.mxu0 %v303_v38 }
  0xbb   : > { %1150 = vmatmul.mubr.f32.gmra.mrb[14].mxu0 %v304_v39 }
  0xbc   : > { %1152 = vmatprep.mubr.f32.mxu0 %v305_v40 }
  0xbf   : > { %1153 = vmatmul.mubr.f32.gmra.mrb[16].mxu0 %v306_v41 }
  0xc0   : > { %1155 = vmatprep.mubr.f32.mxu0 %v307_v42 }
  0xc3   : > { %1156 = vmatmul.mubr.f32.gmra.mrb[18].mxu0 %v308_v43  ;;  %v586_v43 = vld [vmem:[%s1807_s25 + $0xc0] sm:$0xff] }
  0xc4   : > { %1158 = vmatprep.mubr.f32.mxu0 %v309_v44  ;;  %v562_v44 = vld [vmem:[%s1807_s25] sm:$0xff] }
  0xc7   : > { %1159 = vmatmul.mubr.f32.gmra.mrb[20].mxu0 %v310_v45  ;;  %v589_v45 = vld [vmem:[%s1807_s25 + $0xd8] sm:$0xff] }
  0xc8   : > { %1161 = vmatprep.mubr.f32.mxu0 %v311_v46  ;;  %v565_v46 = vld [vmem:[%s1807_s25 + $0x18] sm:$0xff] }
  0xcb   : > { %1162 = vmatmul.mubr.f32.gmra.mrb[22].mxu0 %v312_v47  ;;  %v588_v47 = vld [vmem:[%s1807_s25 + $0xd0] sm:$0xff] }
  0xcc   : > { %1164 = vmatprep.mubr.f32.mxu0 %v313_v48  ;;  %v564_v48 = vld [vmem:[%s1807_s25 + $0x10] sm:$0xff] }
  0xcf   : > { %1165 = vmatmul.mubr.f32.gmra.mrb[24].mxu0 %v314_v49  ;;  %v591_v49 = vld [vmem:[%s1807_s25 + $0xe8] sm:$0xff] }
  0xd0   : > { %1167 = vmatprep.mubr.f32.mxu0 %v315_v50  ;;  %v567_v50 = vld [vmem:[%s1807_s25 + $0x28] sm:$0xff] }
  0xd3   : > { %1168 = vmatmul.mubr.f32.gmra.mrb[26].mxu0 %v316_v51  ;;  %v590_v51 = vld [vmem:[%s1807_s25 + $0xe0] sm:$0xff] }
  0xd4   : > { %1170 = vmatprep.mubr.f32.mxu0 %v317_v52  ;;  %v566_v52 = vld [vmem:[%s1807_s25 + $0x20] sm:$0xff] }
  0xd7   : > { %1171 = vmatmul.mubr.f32.gmra.mrb[28].mxu0 %v318_v53  ;;  %v593_v53 = vld [vmem:[%s1807_s25 + $0xf8] sm:$0xff] }
  0xd8   : > { %1173 = vmatprep.mubr.f32.mxu0 %v319_v54  ;;  %v569_v54 = vld [vmem:[%s1807_s25 + $0x38] sm:$0xff] }
  0xdb   : > { %1174 = vmatmul.mubr.f32.gmra.mrb[30].mxu0 %v320_v55  ;;  %v592_v55 = vld [vmem:[%s1807_s25 + $0xf0] sm:$0xff] }
  0xdc   : > { %697 = vmatprep.mubr.f32.mxu0 %v563_v58  ;;  %v571_v58 = vld [vmem:[%s1807_s25 + $0x48] sm:$0xff] }
 0x172   : > { %v1130_v59 = vpop.f32.mrb[0].mxu0 }
 0x173   : > { %v403_v60 = vpop.f32.mrb[1].mxu0 }
 0x174   : > { %v1209_v61 = vpack.c.bf16 %v1130_v59, %v403_v60  ;;  %v594_v59 = vld [vmem:[%s1807_s25 + $0x100] sm:$0xff] }
 0x175   : > { %v570_v60 = vld [vmem:[%s1807_s25 + $0x40] sm:$0xff] }
 0x176   : > { %v1133_v62 = vpop.f32.mrb[2].mxu0  ;;  %1210 = vmatpush1.bf16.msra.mxu0 %v1209_v61  ;;  %1272 = vmatpush1.bf16.msra.mxu1 %v1209_v61  ;;  %v597_v61 = vld [vmem:[%s1807_s25 + $0x118] sm:$0xff] }
 0x177   : > { %v413_v63 = vpop.f32.mrb[3].mxu0  ;;  %1211 = vmatprep.subr.bf16.mxu0 %v1560_v56  ;;  %1257 = vmatprep.subr.bf16.mxu1 %v1560_v56 }
 0x178   : > { %v1212_v0 = vpack.c.bf16 %v1133_v62, %v413_v63  ;;  %v573_v62 = vld [vmem:[%s1807_s25 + $0x58] sm:$0xff]  ;;  %v596_v63 = vld [vmem:[%s1807_s25 + $0x110] sm:$0xff] }
 0x17a   : > { %v1136_v1 = vpop.f32.mrb[4].mxu0  ;;  %1213 = vmatpush1.bf16.msra.mxu0 %v1212_v0  ;;  %1273 = vmatpush1.bf16.msra.mxu1 %v1212_v0  ;;  %v572_v0 = vld [vmem:[%s1807_s25 + $0x50] sm:$0xff] }
 0x17b   : > { %v423_v2 = vpop.f32.mrb[5].mxu0  ;;  %1214 = vmatprep.subr.bf16.mxu0 %v1560_v56  ;;  %1258 = vmatprep.subr.bf16.mxu1 %v1560_v56 }
 0x17c   : > { %v1215_v3 = vpack.c.bf16 %v1136_v1, %v423_v2  ;;  %v599_v1 = vld [vmem:[%s1807_s25 + $0x128] sm:$0xff] }
 0x17d   : > { %v575_v2 = vld [vmem:[%s1807_s25 + $0x68] sm:$0xff] }
 0x17e   : > { %v1139_v4 = vpop.f32.mrb[6].mxu0  ;;  %1216 = vmatpush1.bf16.msra.mxu0 %v1215_v3  ;;  %1274 = vmatpush1.bf16.msra.mxu1 %v1215_v3  ;;  %v598_v3 = vld [vmem:[%s1807_s25 + $0x120] sm:$0xff] }
 0x17f   : > { %v433_v5 = vpop.f32.mrb[7].mxu0  ;;  %1217 = vmatprep.subr.bf16.mxu0 %v1560_v56  ;;  %1259 = vmatprep.subr.bf16.mxu1 %v1560_v56 }
 0x180   : > { %v1218_v6 = vpack.c.bf16 %v1139_v4, %v433_v5  ;;  %v574_v4 = vld [vmem:[%s1807_s25 + $0x60] sm:$0xff]  ;;  %v601_v5 = vld [vmem:[%s1807_s25 + $0x138] sm:$0xff] }
 0x182   : > { %v1142_v7 = vpop.f32.mrb[8].mxu0  ;;  %1219 = vmatpush1.bf16.msra.mxu0 %v1218_v6  ;;  %1275 = vmatpush1.bf16.msra.mxu1 %v1218_v6  ;;  %v577_v6 = vld [vmem:[%s1807_s25 + $0x78] sm:$0xff] }
 0x183   : > { %v443_v8 = vpop.f32.mrb[9].mxu0  ;;  %1220 = vmatprep.subr.bf16.mxu0 %v1560_v56  ;;  %1260 = vmatprep.subr.bf16.mxu1 %v1560_v56 }
 0x184   : > { %v1221_v9 = vpack.c.bf16 %v1142_v7, %v443_v8  ;;  %v600_v7 = vld [vmem:[%s1807_s25 + $0x130] sm:$0xff] }
 0x185   : > { %v576_v8 = vld [vmem:[%s1807_s25 + $0x70] sm:$0xff] }
 0x186   : > { %v1145_v10 = vpop.f32.mrb[10].mxu0  ;;  %1222 = vmatpush1.bf16.msra.mxu0 %v1221_v9  ;;  %1276 = vmatpush1.bf16.msra.mxu1 %v1221_v9  ;;  %v603_v9 = vld [vmem:[%s1807_s25 + $0x148] sm:$0xff] }
 0x187   : > { %v453_v11 = vpop.f32.mrb[11].mxu0  ;;  %1223 = vmatprep.subr.bf16.mxu0 %v1560_v56  ;;  %1261 = vmatprep.subr.bf16.mxu1 %v1560_v56 }
 0x188   : > { %v1224_v12 = vpack.c.bf16 %v1145_v10, %v453_v11  ;;  %v579_v10 = vld [vmem:[%s1807_s25 + $0x88] sm:$0xff]  ;;  %v602_v11 = vld [vmem:[%s1807_s25 + $0x140] sm:$0xff] }
 0x18a   : > { %v1148_v13 = vpop.f32.mrb[12].mxu0  ;;  %1225 = vmatpush1.bf16.msra.mxu0 %v1224_v12  ;;  %1277 = vmatpush1.bf16.msra.mxu1 %v1224_v12  ;;  %v578_v12 = vld [vmem:[%s1807_s25 + $0x80] sm:$0xff] }
 0x18b   : > { %v463_v14 = vpop.f32.mrb[13].mxu0  ;;  %1226 = vmatprep.subr.bf16.mxu0 %v1560_v56  ;;  %1262 = vmatprep.subr.bf16.mxu1 %v1560_v56 }
 0x18c   : > { %v1227_v15 = vpack.c.bf16 %v1148_v13, %v463_v14  ;;  %v605_v13 = vld [vmem:[%s1807_s25 + $0x158] sm:$0xff] }
 0x18d   : > { %v581_v14 = vld [vmem:[%s1807_s25 + $0x98] sm:$0xff] }
 0x18e   : > { %v1151_v16 = vpop.f32.mrb[14].mxu0  ;;  %1228 = vmatpush1.bf16.msra.mxu0 %v1227_v15  ;;  %1278 = vmatpush1.bf16.msra.mxu1 %v1227_v15  ;;  %v604_v15 = vld [vmem:[%s1807_s25 + $0x150] sm:$0xff] }
 0x18f   : > { %v473_v17 = vpop.f32.mrb[15].mxu0  ;;  %1229 = vmatprep.subr.bf16.mxu0 %v1560_v56  ;;  %1263 = vmatprep.subr.bf16.mxu1 %v1560_v56 }
 0x190   : > { %v1230_v18 = vpack.c.bf16 %v1151_v16, %v473_v17  ;;  %v580_v16 = vld [vmem:[%s1807_s25 + $0x90] sm:$0xff]  ;;  %v607_v17 = vld [vmem:[%s1807_s25 + $0x168] sm:$0xff] }
 0x192   : > { %v1154_v19 = vpop.f32.mrb[16].mxu0  ;;  %1231 = vmatpush1.bf16.msra.mxu0 %v1230_v18  ;;  %1279 = vmatpush1.bf16.msra.mxu1 %v1230_v18  ;;  %v583_v18 = vld [vmem:[%s1807_s25 + $0xa8] sm:$0xff] }
 0x193   : > { %v483_v20 = vpop.f32.mrb[17].mxu0  ;;  %1232 = vmatprep.subr.bf16.mxu0 %v1560_v56  ;;  %1264 = vmatprep.subr.bf16.mxu1 %v1560_v56 }
 0x194   : > { %v1233_v21 = vpack.c.bf16 %v1154_v19, %v483_v20  ;;  %v606_v19 = vld [vmem:[%s1807_s25 + $0x160] sm:$0xff] }
 0x195   : > { %v582_v20 = vld [vmem:[%s1807_s25 + $0xa0] sm:$0xff] }
 0x196   : > { %v1157_v22 = vpop.f32.mrb[18].mxu0  ;;  %1234 = vmatpush1.bf16.msra.mxu0 %v1233_v21  ;;  %1280 = vmatpush1.bf16.msra.mxu1 %v1233_v21  ;;  %v609_v21 = vld [vmem:[%s1807_s25 + $0x178] sm:$0xff] }
 0x197   : > { %v493_v23 = vpop.f32.mrb[19].mxu0  ;;  %1235 = vmatprep.subr.bf16.mxu0 %v1560_v56  ;;  %1265 = vmatprep.subr.bf16.mxu1 %v1560_v56 }
 0x198   : > { %v1236_v24 = vpack.c.bf16 %v1157_v22, %v493_v23  ;;  %v585_v22 = vld [vmem:[%s1807_s25 + $0xb8] sm:$0xff]  ;;  %v608_v23 = vld [vmem:[%s1807_s25 + $0x170] sm:$0xff] }
 0x19a   : > { %v1160_v25 = vpop.f32.mrb[20].mxu0  ;;  %1237 = vmatpush1.bf16.msra.mxu0 %v1236_v24  ;;  %1281 = vmatpush1.bf16.msra.mxu1 %v1236_v24  ;;  %v584_v24 = vld [vmem:[%s1807_s25 + $0xb0] sm:$0xff] }
 0x19b   : > { %v503_v26 = vpop.f32.mrb[21].mxu0  ;;  %1238 = vmatprep.subr.bf16.mxu0 %v1560_v56  ;;  %1266 = vmatprep.subr.bf16.mxu1 %v1560_v56 }
 0x19c   : > { %v1239_v27 = vpack.c.bf16 %v1160_v25, %v503_v26  ;;  %v611_v25 = vld [vmem:[%s1807_s25 + $0x188] sm:$0xff]  ;;  %v610_v26 = vld [vmem:[%s1807_s25 + $0x180] sm:$0xff] }
 0x19e   : > { %v1163_v28 = vpop.f32.mrb[22].mxu0  ;;  %1240 = vmatpush1.bf16.msra.mxu0 %v1239_v27  ;;  %1282 = vmatpush1.bf16.msra.mxu1 %v1239_v27  ;;  %v613_v27 = vld [vmem:[%s1807_s25 + $0x198] sm:$0xff] }
 0x19f   : > { %v513_v29 = vpop.f32.mrb[23].mxu0  ;;  %1241 = vmatprep.subr.bf16.mxu0 %v1560_v56  ;;  %1267 = vmatprep.subr.bf16.mxu1 %v1560_v56 }
 0x1a0   : > { %v1242_v30 = vpack.c.bf16 %v1163_v28, %v513_v29  ;;  %v612_v28 = vld [vmem:[%s1807_s25 + $0x190] sm:$0xff]  ;;  %v615_v29 = vld [vmem:[%s1807_s25 + $0x1a8] sm:$0xff] }
 0x1a2   : > { %v1166_v31 = vpop.f32.mrb[24].mxu0  ;;  %1243 = vmatpush1.bf16.msra.mxu0 %v1242_v30  ;;  %1283 = vmatpush1.bf16.msra.mxu1 %v1242_v30  ;;  %v614_v30 = vld [vmem:[%s1807_s25 + $0x1a0] sm:$0xff] }
 0x1a3   : > { %v523_v32 = vpop.f32.mrb[25].mxu0  ;;  %1244 = vmatprep.subr.bf16.mxu0 %v1560_v56  ;;  %1268 = vmatprep.subr.bf16.mxu1 %v1560_v56 }
 0x1a4   : > { %v1245_v33 = vpack.c.bf16 %v1166_v31, %v523_v32  ;;  %v617_v31 = vld [vmem:[%s1807_s25 + $0x1b8] sm:$0xff]  ;;  %v616_v32 = vld [vmem:[%s1807_s25 + $0x1b0] sm:$0xff] }
 0x1a6   : > { %v1169_v34 = vpop.f32.mrb[26].mxu0  ;;  %1246 = vmatpush1.bf16.msra.mxu0 %v1245_v33  ;;  %1284 = vmatpush1.bf16.msra.mxu1 %v1245_v33  ;;  %v619_v33 = vld [vmem:[%s1807_s25 + $0x1c8] sm:$0xff] }
 0x1a7   : > { %v533_v35 = vpop.f32.mrb[27].mxu0  ;;  %1247 = vmatprep.subr.bf16.mxu0 %v1560_v56  ;;  %1269 = vmatprep.subr.bf16.mxu1 %v1560_v56 }
 0x1a8   : > { %v1248_v36 = vpack.c.bf16 %v1169_v34, %v533_v35  ;;  %v618_v34 = vld [vmem:[%s1807_s25 + $0x1c0] sm:$0xff]  ;;  %v621_v35 = vld [vmem:[%s1807_s25 + $0x1d8] sm:$0xff] }
 0x1aa   : > { %v1172_v37 = vpop.f32.mrb[28].mxu0  ;;  %1249 = vmatpush1.bf16.msra.mxu0 %v1248_v36  ;;  %1285 = vmatpush1.bf16.msra.mxu1 %v1248_v36  ;;  %v620_v36 = vld [vmem:[%s1807_s25 + $0x1d0] sm:$0xff] }
 0x1ab   : > { %v543_v38 = vpop.f32.mrb[29].mxu0  ;;  %1250 = vmatprep.subr.bf16.mxu0 %v1560_v56  ;;  %1270 = vmatprep.subr.bf16.mxu1 %v1560_v56 }
 0x1ac   : > { %v1251_v39 = vpack.c.bf16 %v1172_v37, %v543_v38  ;;  %v623_v37 = vld [vmem:[%s1807_s25 + $0x1e8] sm:$0xff]  ;;  %v622_v38 = vld [vmem:[%s1807_s25 + $0x1e0] sm:$0xff] }
 0x1ae   : > { %v1175_v40 = vpop.f32.mrb[30].mxu0  ;;  %1252 = vmatpush1.bf16.msra.mxu0 %v1251_v39  ;;  %1286 = vmatpush1.bf16.msra.mxu1 %v1251_v39  ;;  %v625_v39 = vld [vmem:[%s1807_s25 + $0x1f8] sm:$0xff] }
 0x1af   : > { %v553_v41 = vpop.f32.mrb[31].mxu0  ;;  %1253 = vmatprep.subr.bf16.mxu0 %v1560_v56  ;;  %1271 = vmatprep.subr.bf16.mxu1 %v1560_v56  ;;  %v568_v56 = vld [vmem:[%s1807_s25 + $0x30] sm:$0xff] }
 0x1b0   : > { %v1254_v42 = vpack.c.bf16 %v1175_v40, %v553_v41  ;;  %v624_v40 = vld [vmem:[%s1807_s25 + $0x1f0] sm:$0xff]  ;;  %v1944_v41 = vld [vmem:[%s2073_s3] ss:$0 sm:$0xff] }
 0x1b2   : > { %1255 = vmatpush1.bf16.msra.mxu0 %v1254_v42  ;;  %1287 = vmatpush1.bf16.msra.mxu1 %v1254_v42 }
 0x1b5   : > { %758 = vmatmul.mubr.f32.vlgmr.msra.gmra.mrb[0].mxu1 %v586_v43  ;;  %698 = vmatmul.mubr.f32.vlgmr.msra.gmra.mrb[32].mxu0 %v562_v44 }
 0x1b6   : > { %762 = vmatprep.mubr.f32.mxu1 %v589_v45  ;;  %702 = vmatprep.mubr.f32.mxu0 %v565_v46 }
 0x1b9   : > { %763 = vmatmul.mubr.f32.gmra.mrb[2].mxu1 %v588_v47  ;;  %703 = vmatmul.mubr.f32.gmra.mrb[34].mxu0 %v564_v48 }
 0x1ba   : > { %767 = vmatprep.mubr.f32.mxu1 %v591_v49  ;;  %707 = vmatprep.mubr.f32.mxu0 %v567_v50 }
 0x1bd   : > { %768 = vmatmul.mubr.f32.gmra.mrb[4].mxu1 %v590_v51  ;;  %708 = vmatmul.mubr.f32.gmra.mrb[36].mxu0 %v566_v52 }
 0x1be   : > { %772 = vmatprep.mubr.f32.mxu1 %v593_v53  ;;  %712 = vmatprep.mubr.f32.mxu0 %v569_v54 }
 0x1c1   : > { %773 = vmatmul.mubr.f32.gmra.mrb[6].mxu1 %v592_v55  ;;  %713 = vmatmul.mubr.f32.gmra.mrb[38].mxu0 %v568_v56 }
 0x1c2   : > { %777 = vmatprep.mubr.f32.mxu1 %v595_v57  ;;  %717 = vmatprep.mubr.f32.mxu0 %v571_v58 }
 0x1c5   : > { %778 = vmatmul.mubr.f32.gmra.mrb[8].mxu1 %v594_v59  ;;  %718 = vmatmul.mubr.f32.gmra.mrb[40].mxu0 %v570_v60 }
 0x1c6   : > { %782 = vmatprep.mubr.f32.mxu1 %v597_v61  ;;  %722 = vmatprep.mubr.f32.mxu0 %v573_v62 }
 0x1c9   : > { %783 = vmatmul.mubr.f32.gmra.mrb[10].mxu1 %v596_v63  ;;  %723 = vmatmul.mubr.f32.gmra.mrb[42].mxu0 %v572_v0 }
 0x1ca   : > { %787 = vmatprep.mubr.f32.mxu1 %v599_v1  ;;  %727 = vmatprep.mubr.f32.mxu0 %v575_v2 }
 0x1cd   : > { %788 = vmatmul.mubr.f32.gmra.mrb[12].mxu1 %v598_v3  ;;  %728 = vmatmul.mubr.f32.gmra.mrb[44].mxu0 %v574_v4 }
 0x1ce   : > { %792 = vmatprep.mubr.f32.mxu1 %v601_v5  ;;  %732 = vmatprep.mubr.f32.mxu0 %v577_v6 }
 0x1d1   : > { %793 = vmatmul.mubr.f32.gmra.mrb[14].mxu1 %v600_v7  ;;  %733 = vmatmul.mubr.f32.gmra.mrb[46].mxu0 %v576_v8 }
 0x1d2   : > { %797 = vmatprep.mubr.f32.mxu1 %v603_v9  ;;  %737 = vmatprep.mubr.f32.mxu0 %v579_v10 }
 0x1d5   : > { %798 = vmatmul.mubr.f32.gmra.mrb[16].mxu1 %v602_v11  ;;  %738 = vmatmul.mubr.f32.gmra.mrb[48].mxu0 %v578_v12 }
 0x1d6   : > { %802 = vmatprep.mubr.f32.mxu1 %v605_v13  ;;  %742 = vmatprep.mubr.f32.mxu0 %v581_v14 }
 0x1d9   : > { %803 = vmatmul.mubr.f32.gmra.mrb[18].mxu1 %v604_v15  ;;  %743 = vmatmul.mubr.f32.gmra.mrb[50].mxu0 %v580_v16 }
 0x1da   : > { %807 = vmatprep.mubr.f32.mxu1 %v607_v17  ;;  %747 = vmatprep.mubr.f32.mxu0 %v583_v18 }
 0x1dd   : > { %808 = vmatmul.mubr.f32.gmra.mrb[20].mxu1 %v606_v19  ;;  %748 = vmatmul.mubr.f32.gmra.mrb[52].mxu0 %v582_v20 }
 0x1de   : > { %812 = vmatprep.mubr.f32.mxu1 %v609_v21  ;;  %752 = vmatprep.mubr.f32.mxu0 %v585_v22 }
 0x1e1   : > { %813 = vmatmul.mubr.f32.gmra.mrb[22].mxu1 %v608_v23  ;;  %753 = vmatmul.mubr.f32.gmra.mrb[54].mxu0 %v584_v24 }
 0x1e2   : > { %817 = vmatprep.mubr.f32.mxu1 %v611_v25 }
 0x1e5   : > { %818 = vmatmul.mubr.f32.gmra.mrb[24].mxu1 %v610_v26 }
 0x1e6   : > { %822 = vmatprep.mubr.f32.mxu1 %v613_v27 }
 0x1e9   : > { %823 = vmatmul.mubr.f32.gmra.mrb[26].mxu1 %v612_v28 }
 0x1ea   : > { %827 = vmatprep.mubr.f32.mxu1 %v615_v29 }
 0x1ed   : > { %828 = vmatmul.mubr.f32.gmra.mrb[28].mxu1 %v614_v30 }
 0x1ee   : > { %832 = vmatprep.mubr.f32.mxu1 %v617_v31 }
 0x1f1   : > { %833 = vmatmul.mubr.f32.gmra.mrb[30].mxu1 %v616_v32 }
 0x1f2   : > { %837 = vmatprep.mubr.f32.mxu1 %v619_v33 }
 0x1f5   : > { %838 = vmatmul.mubr.f32.gmra.mrb[32].mxu1 %v618_v34 }
 0x1f6   : > { %842 = vmatprep.mubr.f32.mxu1 %v621_v35 }
 0x1f9   : > { %843 = vmatmul.mubr.f32.gmra.mrb[34].mxu1 %v620_v36 }
 0x1fa   : > { %847 = vmatprep.mubr.f32.mxu1 %v623_v37 }
 0x1fd   : > { %848 = vmatmul.mubr.f32.gmra.mrb[36].mxu1 %v622_v38 }
 0x1fe   : > { %852 = vmatprep.mubr.f32.mxu1 %v625_v39 }
 0x201   : > { %853 = vmatmul.mubr.f32.gmra.mrb[38].mxu1 %v624_v40 }
 0x288   : > { %v759_v42 = vpop.f32.mrb[0].mxu1  ;;  %v699_v43 = vpop.f32.mrb[32].mxu0 }
 0x289   : > { %v760_v44 = vadd.f32 %v1944_v41, %v759_v42  ;;  %v761_v45 = vpop.f32.mrb[1].mxu1  ;;  %v700_v46 = vadd.f32 %v1944_v41, %v699_v43  ;;  %v701_v47 = vpop.f32.mrb[33].mxu0 }
 0x28b   : > { %870 = vst [vmem:[%s1950_s26 + $0x60] sm:$0xff] %v760_v44  ;;  %858 = vst [vmem:[%s1950_s26] sm:$0xff] %v700_v46 }
 0x28c   : > { %v764_v48 = vpop.f32.mrb[2].mxu1  ;;  %v704_v49 = vpop.f32.mrb[34].mxu0 }
 0x28d   : > { %v765_v50 = vadd.f32 %v1944_v41, %v764_v48  ;;  %v766_v51 = vpop.f32.mrb[3].mxu1  ;;  %v705_v52 = vadd.f32 %v1944_v41, %v704_v49  ;;  %v706_v53 = vpop.f32.mrb[35].mxu0 }
 0x28f   : > { %871 = vst [vmem:[%s1950_s26 + $0x68] sm:$0xff] %v765_v50  ;;  %859 = vst [vmem:[%s1950_s26 + $0x8] sm:$0xff] %v705_v52 }
 0x290   : > { %v769_v54 = vpop.f32.mrb[4].mxu1  ;;  %v709_v55 = vpop.f32.mrb[36].mxu0 }
 0x291   : > { %v770_v56 = vadd.f32 %v1944_v41, %v769_v54  ;;  %v771_v57 = vpop.f32.mrb[5].mxu1  ;;  %v710_v58 = vadd.f32 %v1944_v41, %v709_v55  ;;  %v711_v59 = vpop.f32.mrb[37].mxu0 }
 0x293   : > { %872 = vst [vmem:[%s1950_s26 + $0x70] sm:$0xff] %v770_v56  ;;  %860 = vst [vmem:[%s1950_s26 + $0x10] sm:$0xff] %v710_v58 }
 0x294   : > { %v774_v60 = vpop.f32.mrb[6].mxu1  ;;  %v714_v61 = vpop.f32.mrb[38].mxu0 }
 0x295   : > { %v775_v62 = vadd.f32 %v1944_v41, %v774_v60  ;;  %v776_v63 = vpop.f32.mrb[7].mxu1  ;;  %v715_v0 = vadd.f32 %v1944_v41, %v714_v61  ;;  %v716_v1 = vpop.f32.mrb[39].mxu0 }
 0x297   : > { %873 = vst [vmem:[%s1950_s26 + $0x78] sm:$0xff] %v775_v62  ;;  %861 = vst [vmem:[%s1950_s26 + $0x18] sm:$0xff] %v715_v0 }
 0x298   : > { %v779_v2 = vpop.f32.mrb[8].mxu1  ;;  %v719_v3 = vpop.f32.mrb[40].mxu0 }
 0x299   : > { %v780_v4 = vadd.f32 %v1944_v41, %v779_v2  ;;  %v781_v5 = vpop.f32.mrb[9].mxu1  ;;  %v720_v6 = vadd.f32 %v1944_v41, %v719_v3  ;;  %v721_v7 = vpop.f32.mrb[41].mxu0 }
 0x29b   : > { %874 = vst [vmem:[%s1950_s26 + $0x80] sm:$0xff] %v780_v4  ;;  %862 = vst [vmem:[%s1950_s26 + $0x20] sm:$0xff] %v720_v6 }
 0x29c   : > { %v784_v8 = vpop.f32.mrb[10].mxu1  ;;  %v724_v9 = vpop.f32.mrb[42].mxu0 }
 0x29d   : > { %v785_v10 = vadd.f32 %v1944_v41, %v784_v8  ;;  %v786_v11 = vpop.f32.mrb[11].mxu1  ;;  %v725_v12 = vadd.f32 %v1944_v41, %v724_v9  ;;  %v726_v13 = vpop.f32.mrb[43].mxu0 }
 0x29f   : > { %875 = vst [vmem:[%s1950_s26 + $0x88] sm:$0xff] %v785_v10  ;;  %863 = vst [vmem:[%s1950_s26 + $0x28] sm:$0xff] %v725_v12 }
 0x2a0   : > { %v789_v14 = vpop.f32.mrb[12].mxu1  ;;  %v729_v15 = vpop.f32.mrb[44].mxu0 }
 0x2a1   : > { %v790_v16 = vadd.f32 %v1944_v41, %v789_v14  ;;  %v791_v17 = vpop.f32.mrb[13].mxu1  ;;  %v730_v18 = vadd.f32 %v1944_v41, %v729_v15  ;;  %v731_v19 = vpop.f32.mrb[45].mxu0 }
 0x2a3   : > { %876 = vst [vmem:[%s1950_s26 + $0x90] sm:$0xff] %v790_v16  ;;  %864 = vst [vmem:[%s1950_s26 + $0x30] sm:$0xff] %v730_v18 }
 0x2a4   : > { %v794_v20 = vpop.f32.mrb[14].mxu1  ;;  %v734_v21 = vpop.f32.mrb[46].mxu0 }
 0x2a5   : > { %v795_v22 = vadd.f32 %v1944_v41, %v794_v20  ;;  %v796_v23 = vpop.f32.mrb[15].mxu1  ;;  %v735_v24 = vadd.f32 %v1944_v41, %v734_v21  ;;  %v736_v25 = vpop.f32.mrb[47].mxu0 }
 0x2a7   : > { %877 = vst [vmem:[%s1950_s26 + $0x98] sm:$0xff] %v795_v22  ;;  %865 = vst [vmem:[%s1950_s26 + $0x38] sm:$0xff] %v735_v24 }
 0x2a8   : > { %v799_v26 = vpop.f32.mrb[16].mxu1  ;;  %v739_v27 = vpop.f32.mrb[48].mxu0 }
 0x2a9   : > { %v800_v28 = vadd.f32 %v1944_v41, %v799_v26  ;;  %v801_v29 = vpop.f32.mrb[17].mxu1  ;;  %v740_v30 = vadd.f32 %v1944_v41, %v739_v27  ;;  %v741_v31 = vpop.f32.mrb[49].mxu0 }
 0x2ab   : > { %878 = vst [vmem:[%s1950_s26 + $0xa0] sm:$0xff] %v800_v28  ;;  %866 = vst [vmem:[%s1950_s26 + $0x40] sm:$0xff] %v740_v30 }
 0x2ac   : > { %v804_v32 = vpop.f32.mrb[18].mxu1  ;;  %v744_v33 = vpop.f32.mrb[50].mxu0 }
 0x2ad   : > { %v805_v34 = vadd.f32 %v1944_v41, %v804_v32  ;;  %v806_v35 = vpop.f32.mrb[19].mxu1  ;;  %v745_v36 = vadd.f32 %v1944_v41, %v744_v33  ;;  %v746_v37 = vpop.f32.mrb[51].mxu0 }
 0x2af   : > { %879 = vst [vmem:[%s1950_s26 + $0xa8] sm:$0xff] %v805_v34  ;;  %867 = vst [vmem:[%s1950_s26 + $0x48] sm:$0xff] %v745_v36 }
 0x2b0   : > { %v809_v38 = vpop.f32.mrb[20].mxu1  ;;  %v749_v39 = vpop.f32.mrb[52].mxu0 }
 0x2b1   : > { %v810_v40 = vadd.f32 %v1944_v41, %v809_v38  ;;  %v811_v42 = vpop.f32.mrb[21].mxu1  ;;  %v750_v43 = vadd.f32 %v1944_v41, %v749_v39  ;;  %v751_v44 = vpop.f32.mrb[53].mxu0 }
 0x2b3   : > { %880 = vst [vmem:[%s1950_s26 + $0xb0] sm:$0xff] %v810_v40  ;;  %868 = vst [vmem:[%s1950_s26 + $0x50] sm:$0xff] %v750_v43 }
 0x2b4   : > { %v814_v45 = vpop.f32.mrb[22].mxu1  ;;  %v754_v46 = vpop.f32.mrb[54].mxu0 }
 0x2b5   : > { %v815_v47 = vadd.f32 %v1944_v41, %v814_v45  ;;  %v816_v48 = vpop.f32.mrb[23].mxu1  ;;  %v755_v49 = vadd.f32 %v1944_v41, %v754_v46  ;;  %v756_v50 = vpop.f32.mrb[55].mxu0 }
 0x2b7   : > { %881 = vst [vmem:[%s1950_s26 + $0xb8] sm:$0xff] %v815_v47  ;;  %869 = vst [vmem:[%s1950_s26 + $0x58] sm:$0xff] %v755_v49 }
 0x2b8   : > { %v819_v51 = vpop.f32.mrb[24].mxu1 }
 0x2b9   : > { %v820_v52 = vadd.f32 %v1944_v41, %v819_v51  ;;  %v821_v53 = vpop.f32.mrb[25].mxu1 }
 0x2bb   : > { %882 = vst [vmem:[%s1950_s26 + $0xc0] sm:$0xff] %v820_v52 }
 0x2bc   : > { %v824_v54 = vpop.f32.mrb[26].mxu1 }
 0x2bd   : > { %v825_v55 = vadd.f32 %v1944_v41, %v824_v54  ;;  %v826_v56 = vpop.f32.mrb[27].mxu1 }
 0x2bf   : > { %883 = vst [vmem:[%s1950_s26 + $0xc8] sm:$0xff] %v825_v55 }
 0x2c0   : > { %v829_v57 = vpop.f32.mrb[28].mxu1 }
 0x2c1   : > { %v830_v58 = vadd.f32 %v1944_v41, %v829_v57  ;;  %v831_v59 = vpop.f32.mrb[29].mxu1 }
 0x2c3   : > { %884 = vst [vmem:[%s1950_s26 + $0xd0] sm:$0xff] %v830_v58 }
 0x2c4   : > { %v834_v60 = vpop.f32.mrb[30].mxu1 }
 0x2c5   : > { %v835_v61 = vadd.f32 %v1944_v41, %v834_v60  ;;  %v836_v62 = vpop.f32.mrb[31].mxu1 }
 0x2c7   : > { %885 = vst [vmem:[%s1950_s26 + $0xd8] sm:$0xff] %v835_v61 }
 0x2c8   : > { %v839_v63 = vpop.f32.mrb[32].mxu1 }
 0x2c9   : > { %v840_v0 = vadd.f32 %v1944_v41, %v839_v63  ;;  %v841_v1 = vpop.f32.mrb[33].mxu1 }
 0x2cb   : > { %886 = vst [vmem:[%s1950_s26 + $0xe0] sm:$0xff] %v840_v0 }
 0x2cc   : > { %v844_v2 = vpop.f32.mrb[34].mxu1 }
 0x2cd   : > { %v845_v3 = vadd.f32 %v1944_v41, %v844_v2  ;;  %v846_v4 = vpop.f32.mrb[35].mxu1 }
 0x2cf   : > { %887 = vst [vmem:[%s1950_s26 + $0xe8] sm:$0xff] %v845_v3 }
 0x2d0   : > { %v849_v5 = vpop.f32.mrb[36].mxu1 }
 0x2d1   : > { %v850_v6 = vadd.f32 %v1944_v41, %v849_v5  ;;  %v851_v7 = vpop.f32.mrb[37].mxu1 }
 0x2d3   : > { %888 = vst [vmem:[%s1950_s26 + $0xf0] sm:$0xff] %v850_v6 }
 0x2d4   : > { %v854_v8 = vpop.f32.mrb[38].mxu1 }
 0x2d5   : > { %v855_v9 = vadd.f32 %v1944_v41, %v854_v8  ;;  %v856_v10 = vpop.f32.mrb[39].mxu1 }
 0x2d7   : > { %889 = vst [vmem:[%s1950_s26 + $0xf8] sm:$0xff] %v855_v9 }
 0x2d8   : > { %1474 = shalt.err (!%p1471_p6)
}
 0x2d9   : > { %s1475_s12 = scalar_lea.hbm %s2017_s9, 4096  ;;  %s1479_s14 = scalar_lea.hbm %s2074_s4, 8192 }
 0x2da   : > { %p1476_p12 = scmp.ne.s32.totalorder %s2017_s9, %s1475_s12  ;;  %p1480_p11 = scmp.lt.u32.totalorder %s2017_s9, %s2074_s4 }
 0x2db   : > { %p1481_p0 = scmp.lt.u32.totalorder %s1479_s14, %s1475_s12  ;;  %p1483_p8 = scmp.lt.u32.totalorder %s1475_s12, %s2017_s9 }
 0x2dc   : > { %p1477_p10 = pnand %p1476_p12, %p2100_p13 }
 0x2dd   : > { %p1482_p5 = por %p1481_p0, %p1480_p11 }
 0x2de   : > { %p1478_p9 = pneg %p1477_p10 }
 0x2df   : > { %p1484_p3 = por %p1483_p8, %p1482_p5 }
 0x2e1   : > { %p1485_p7 = pnand %p1484_p3, %p1478_p9 }
 0x2e3   : > { %1488 = shalt.err (!%p1485_p7)
}
 0x2e4   : > { %s1562_s13 = smov 128   ;;  %s1563_s22 = smov 8  }
 0x2e5   : > { %1296 = dma.vmem_to_hbm [thread:$0]  (%p2100_p13), %s2019_s10, 4096, %s2017_s9, %s891_s0, %s1562_s13, %s1562_s13, %s1563_s22  }
 0x2e6 PF: > { %s921_s26 = sand.u32 1, %s1531_s15   ;;  %p2101_p1 = scmp.ne.s32.totalorder %s2090_s8, 0 }
 0x2e7   : > { %p2102_p4 = scmp.ge.s32.totalorder %s1551_s20, 2  ;;  %s922_s28 = scalar_lea.sflag [#allocation4], %s921_s26 }
 0x2e9   : > { %p1310_p2 = pnand %p2102_p4, %p2101_p1 }
 0x2eb   : > { %1526 = dma.done.wait (!%p1310_p2), %s922_s28, 4096  }
 0x2ec   : > { %1528 = vsyncadd (!%p1310_p2), %s922_s28, 4294963200  ;;  %s21_s20 = sadd.s32 1, %s1551_s20   ;;  %s2103_s6 = sld [smem:[#allocation13_spill]] }
 0x2ed   : > { %p18_p6 = scmp.ge.s32.totalorder %s21_s20, 4   ;;  %s2104_s15 = smov %s1535_s16 }
 0x2ee   : > { %s2105_s16 = smov %s1539_s17  ;;  %s2106_s17 = smov %s1640_s27 }
 0x2ef   : > { %s2107_s18 = smov %s1547_s19  ;;  %20 = sbr.rel (!%p18_p6) target bundleno = 10 (0xa), region = 96 }
 0x2f2   : > { %s2108_s19 = smov %s2103_s6 }
 0x2f6   :  { %927 = vsyncpa [#allocation3], 1 }
 0x2f7   :  { %929 = vsyncpa [#allocation3 + $0x1], 1 }
 0x2f8   :  { %930 = vsyncpa [#allocation6], 1 }
 0x2f9   :  { %931 = vsyncpa [#allocation4], 1 }
 0x2fa   :  { %933 = vsyncpa [#allocation4 + $0x1], 1 }

</bundles_post_ra>
